<compile_context>
chip_gen: v7x
topology: tpu7x:2x2x1
jax: 0.10.0
libtpu: 0.0.40
codegen_flags: <defaults>
</compile_context>

<pallas_src>
import functools

import jax
import jax.numpy as jnp
from jax.experimental import pallas as pl
from jax.experimental.pallas import tpu as pltpu


def _kd_lwf_kernel(s_ref, t_ref, o_ref, *, inv_T, n_rows, tile_n, ragged, approx_recip):
    i = pl.program_id(0)

    s = s_ref[...].astype(jnp.float32) * inv_T
    t = t_ref[...].astype(jnp.float32) * inv_T

    # Student log-sum-exp (for log_softmax) along the class (lane) dim.
    s_max = jnp.max(s, axis=-1, keepdims=True)
    s_shift = s - s_max
    s_lse = jnp.log(jnp.sum(jnp.exp(s_shift), axis=-1, keepdims=True))  # (tile_n, 1)

    # Teacher shifted logits / unnormalized softmax.
    t_max = jnp.max(t, axis=-1, keepdims=True)
    t_shift = t - t_max
    t_exp = jnp.exp(t_shift)
    t_sum = jnp.sum(t_exp, axis=-1, keepdims=True)                      # (tile_n, 1)

    # sum_c p_t*(log p_t - log p_s)
    #   = [sum_c t_exp*(t_shift - s_shift)] / t_sum + s_lse - log(t_sum)
    inner = jnp.sum(t_exp * (t_shift - s_shift), axis=-1, keepdims=True)
    kl_row = (inner * pl.reciprocal(t_sum, approx=approx_recip)
              + s_lse - jnp.log(t_sum))                                  # (tile_n, 1)

    if ragged:
        # Mask rows of the (possibly ragged) last tile.  Garbage in padded rows stays
        # per-row, so masking after the per-row KL is sufficient.
        row_ids = i * tile_n + jax.lax.broadcasted_iota(jnp.int32, (tile_n, 1), 0)
        kl_row = jnp.where(row_ids < n_rows, kl_row, 0.0)

    # One partial sum per grid step; summed + scaled by T^2 / N in the wrapper.
    o_ref[...] = jnp.sum(kl_row, axis=0, keepdims=True).reshape(1, 1, 1)


def _choose_tile_n(n_rows, n_classes, itemsize, max_tile_n, input_budget_bytes):
    # 2 inputs x 2 pipeline buffers of (tile_n, n_classes) each must fit the budget.
    by_budget = max(1, input_budget_bytes // (4 * n_classes * itemsize))
    t = min(int(max_tile_n), int(by_budget))
    if t >= n_rows:
        return n_rows                    # one full-extent block (any n_rows is legal)
    return max(8, (t // 8) * 8)          # sub-full blocks: sublane dim must be a multiple of 8


def kd_loss_lwf(out_s, out_t, T, *, max_tile_n=1024, approx_recip=True,
                input_budget_bytes=8 * 1024 * 1024,
                vmem_limit_bytes=32 * 1024 * 1024):
    """Pallas implementation of KDLossLwF.forward.  out_s/out_t: [N, C] logits."""
    N, C = out_s.shape
    assert out_t.shape == (N, C)

    itemsize = max(jnp.dtype(out_s.dtype).itemsize, jnp.dtype(out_t.dtype).itemsize)
    tile_n = _choose_tile_n(N, C, itemsize, max_tile_n, input_budget_bytes)
    num_blocks = pl.cdiv(N, tile_n)
    ragged = (N % tile_n) != 0

    kernel = functools.partial(
        _kd_lwf_kernel, inv_T=1.0 / float(T), n_rows=N, tile_n=tile_n,
        ragged=ragged, approx_recip=approx_recip)

    partials = pl.pallas_call(
        kernel,
        out_shape=jax.ShapeDtypeStruct((num_blocks, 1, 1), jnp.float32),
        grid_spec=pltpu.PrefetchScalarGridSpec(
            num_scalar_prefetch=0,
            grid=(num_blocks,),
            in_specs=[
                pl.BlockSpec((tile_n, C), lambda i: (i, 0)),
                pl.BlockSpec((tile_n, C), lambda i: (i, 0)),
            ],
            out_specs=pl.BlockSpec((1, 1, 1), lambda i: (i, 0, 0)),
        ),
        compiler_params=pltpu.CompilerParams(
            dimension_semantics=("parallel",),
            vmem_limit_bytes=vmem_limit_bytes,
        ),
    )(out_s, out_t)

    # Final tiny reduction over per-block partials + batchmean * T^2 scaling.
    return jnp.sum(partials) * (float(T) * float(T) / float(N))


def kd_loss_lwf_ref(out_s, out_t, T):
    """Pure-JAX reference (mirrors the PyTorch forward)."""
    log_ps = jax.nn.log_softmax(out_s / T, axis=1)
    p_t = jax.nn.softmax(out_t / T, axis=1)
    kl = jnp.sum(p_t * (jnp.log(p_t) - log_ps))
    return kl / out_s.shape[0] * T * T


if __name__ == "__main__":
    key = jax.random.PRNGKey(0)
    k1, k2 = jax.random.split(key)

    N, C = 20, 160        # small batch / num_classes demo shapes
    T = 2.0               # distillation temperature (module __init__ arg)

    out_s = jax.random.normal(k1, (N, C), dtype=jnp.float32)
    out_t = jax.random.normal(k2, (N, C), dtype=jnp.float32)

    ref = kd_loss_lwf_ref(out_s, out_t, T)

    # Exact-reciprocal path (tight numerical check).
    loss_exact = jax.block_until_ready(kd_loss_lwf(out_s, out_t, T, approx_recip=False))
    assert jnp.allclose(loss_exact, ref, rtol=1e-5, atol=1e-5), (loss_exact, ref)

    # Default perf config (auto tile size, approx reciprocal on the EUP).
    loss_fast = jax.block_until_ready(kd_loss_lwf(out_s, out_t, T))
    assert jnp.allclose(loss_fast, ref, rtol=5e-3, atol=5e-3), (loss_fast, ref)

    # Multi-block "parallel" path with a ragged last tile (forces tile_n=8 -> 3 blocks).
    loss_tiled = jax.block_until_ready(kd_loss_lwf(out_s, out_t, T, max_tile_n=8))
    assert jnp.allclose(loss_tiled, ref, rtol=5e-3, atol=5e-3), (loss_tiled, ref)

    # bf16 inputs (halves HBM traffic; reductions stay in f32 inside the kernel).
    s_bf, t_bf = out_s.astype(jnp.bfloat16), out_t.astype(jnp.bfloat16)
    ref_bf = kd_loss_lwf_ref(s_bf.astype(jnp.float32), t_bf.astype(jnp.float32), T)
    loss_bf = jax.block_until_ready(kd_loss_lwf(s_bf, t_bf, T))
    assert jnp.allclose(loss_bf, ref_bf, rtol=5e-3, atol=5e-3), (loss_bf, ref_bf)

    print("KERNEL_OK")
</pallas_src>

<mosaic_0001>
module attributes {stable_mosaic.version = 11 : i64} {
  func.func @_kd_lwf_kernel(%arg0: i32, %arg1: memref<20x160xf32, #tpu.memory_space<vmem>>, %arg2: memref<20x160xf32, #tpu.memory_space<vmem>>, %arg3: memref<1x1x1xf32, #tpu.memory_space<vmem>>) attributes {dimension_semantics = [#tpu.dimension_semantics<parallel>], iteration_bounds = array<i64: 1>, scalar_prefetch = 0 : i64, scratch_operands = 0 : i64, tpu.core_type = #tpu.core_type<tc>, window_params = [{transform_indices = @transform_0, window_bounds = array<i64: 20, 160>}, {transform_indices = @transform_1, window_bounds = array<i64: 20, 160>}, {transform_indices = @transform_2, window_bounds = array<i64: 1, 1, 1>}]} {
    %c0 = arith.constant 0 : index
    %c0_0 = arith.constant 0 : index
    %0 = vector.load %arg1[%c0, %c0_0] : memref<20x160xf32, #tpu.memory_space<vmem>>, vector<20x160xf32>
    %cst = arith.constant 5.000000e-01 : f32
    %1 = vector.broadcast %cst : f32 to vector<20x160xf32>
    %2 = arith.mulf %0, %1 : vector<20x160xf32>
    %c0_1 = arith.constant 0 : index
    %c0_2 = arith.constant 0 : index
    %3 = vector.load %arg2[%c0_1, %c0_2] : memref<20x160xf32, #tpu.memory_space<vmem>>, vector<20x160xf32>
    %cst_3 = arith.constant 5.000000e-01 : f32
    %4 = vector.broadcast %cst_3 : f32 to vector<20x160xf32>
    %5 = arith.mulf %3, %4 : vector<20x160xf32>
    %cst_4 = arith.constant dense<0xFF800000> : vector<20xf32>
    %6 = vector.multi_reduction <maximumf>, %2, %cst_4 [1] : vector<20x160xf32> to vector<20xf32>
    %7 = vector.shape_cast %6 : vector<20xf32> to vector<20x1xf32>
    %8 = vector.broadcast %7 : vector<20x1xf32> to vector<20x160xf32>
    %9 = arith.subf %2, %8 : vector<20x160xf32>
    %10 = math.exp %9 : vector<20x160xf32>
    %cst_5 = arith.constant dense<0.000000e+00> : vector<20xf32>
    %11 = vector.multi_reduction <add>, %10, %cst_5 [1] : vector<20x160xf32> to vector<20xf32>
    %12 = vector.shape_cast %11 : vector<20xf32> to vector<20x1xf32>
    %13 = math.log %12 : vector<20x1xf32>
    %cst_6 = arith.constant dense<0xFF800000> : vector<20xf32>
    %14 = vector.multi_reduction <maximumf>, %5, %cst_6 [1] : vector<20x160xf32> to vector<20xf32>
    %15 = vector.shape_cast %14 : vector<20xf32> to vector<20x1xf32>
    %16 = vector.broadcast %15 : vector<20x1xf32> to vector<20x160xf32>
    %17 = arith.subf %5, %16 : vector<20x160xf32>
    %18 = math.exp %17 : vector<20x160xf32>
    %cst_7 = arith.constant dense<0.000000e+00> : vector<20xf32>
    %19 = vector.multi_reduction <add>, %18, %cst_7 [1] : vector<20x160xf32> to vector<20xf32>
    %20 = vector.shape_cast %19 : vector<20xf32> to vector<20x1xf32>
    %21 = arith.subf %17, %9 : vector<20x160xf32>
    %22 = arith.mulf %18, %21 : vector<20x160xf32>
    %cst_8 = arith.constant dense<0.000000e+00> : vector<20xf32>
    %23 = vector.multi_reduction <add>, %22, %cst_8 [1] : vector<20x160xf32> to vector<20xf32>
    %24 = vector.shape_cast %23 : vector<20xf32> to vector<20x1xf32>
    %25 = tpu.reciprocal %20 : vector<20x1xf32> -> vector<20x1xf32>
    %26 = arith.mulf %24, %25 : vector<20x1xf32>
    %27 = arith.addf %26, %13 : vector<20x1xf32>
    %28 = math.log %20 : vector<20x1xf32>
    %29 = arith.subf %27, %28 : vector<20x1xf32>
    %cst_9 = arith.constant dense<0.000000e+00> : vector<1xf32>
    %30 = vector.multi_reduction <add>, %29, %cst_9 [0] : vector<20x1xf32> to vector<1xf32>
    %31 = vector.shape_cast %30 : vector<1xf32> to vector<1x1xf32>
    %32 = vector.shape_cast %31 : vector<1x1xf32> to vector<1x1x1xf32>
    %c0_10 = arith.constant 0 : index
    %c0_11 = arith.constant 0 : index
    %c0_12 = arith.constant 0 : index
    %33 = vector.load %arg3[%c0_10, %c0_11, %c0_12] : memref<1x1x1xf32, #tpu.memory_space<vmem>>, vector<1x1x1xf32>
    tpu.vector_store %arg3[%c0_10, %c0_11, %c0_12], %32 {strides = array<i32>} : memref<1x1x1xf32, #tpu.memory_space<vmem>>, vector<1x1x1xf32>,
    return
  }
  func.func @transform_0(%arg0: i32) -> (i32, i32) {
    %c0_i32 = arith.constant 0 : i32
    %c0_i32_0 = arith.constant 0 : i32
    return %arg0, %c0_i32 : i32, i32
  }
  func.func @transform_1(%arg0: i32) -> (i32, i32) {
    %c0_i32 = arith.constant 0 : i32
    %c0_i32_0 = arith.constant 0 : i32
    return %arg0, %c0_i32 : i32, i32
  }
  func.func @transform_2(%arg0: i32) -> (i32, i32, i32) {
    %c0_i32 = arith.constant 0 : i32
    %c0_i32_0 = arith.constant 0 : i32
    %c0_i32_1 = arith.constant 0 : i32
    return %arg0, %c0_i32, %c0_i32_0 : i32, i32, i32
  }
}

</mosaic_0001>

<bundles_post_ra>
// kernel: tpu_custom_call.1
= control target key start
LH: loop header
LB: loop body
LE: loop exit
PB: predicated region body
PF: predicated region fallthrough
CT: control target
= control target key end

     0   :  { %7 = vsyncpa [#allocation3], 0  ;;  %s447_s0 = inlined_call_operand.hbm [shape: f32[20,160], index: 0, kind: input, shape index: {}]   ;;  %s448_s1 = inlined_call_operand.hbm [shape: f32[20,160], index: 1, kind: input, shape index: {}]   ;;  %s449_s2 = inlined_call_operand.hbm [shape: f32[1,1,1], index: 2, kind: output, shape index: {}]  }
   0x1   :  { %8 = vsyncpa [#allocation6], 0 }
   0x2   :  { %9 = vsyncpa [#allocation4], 0  ;;  %s350_s9 = smov [#allocation2]   ;;  %s278_s13 = scalar_lea.hbm %s447_s0, 768 }
   0x3   :  { %s15_s10 = sshll.u32 %s350_s9, 4  ;;  %p279_p0 = scmp.ne.s32.totalorder %s447_s0, %s278_s13  ;;  %s16_s10 = int_to_ptr.vmem [resolvable:$true] %s15_s10 }
   0x4   :  { %p282_p1 = scmp.lt.u32.totalorder %s278_s13, %s447_s0 }
   0x6   :  { %p284_p2 = pnand %p282_p1, %p279_p0 }
   0x8   :  { %287 = shalt.err (!%p284_p2)
}
   0x9   :  { %s288_s18 = scalar_lea.vmem %s16_s10, 768  ;;  %p293_p4 = scmp.lt.s32.totalorder %s16_s10, %s16_s10 }
   0xa   :  { %p289_p3 = scmp.ne.s32.totalorder %s16_s10, %s288_s18  ;;  %p294_p5 = scmp.lt.s32.totalorder %s288_s18, %s288_s18 }
   0xc   :  { %p295_p6 = por %p294_p5, %p293_p4 }
   0xe   :  { %p296_p7 = pnand %p295_p6, %p289_p3 }
  0x10   :  { %299 = shalt.err (!%p296_p7)
}
  0x11   :  { %s351_s19 = smov 256   ;;  %s352_s20 = smov 16  }
  0x12   :  { %21 = dma.hbm_to_vmem [thread:$0]  %s447_s0, 768, %s16_s10, [#allocation3], %s351_s19, %s351_s19, %s352_s20  }
  0x13   :  { %s353_s23 = smov [#allocation5]   ;;  %s300_s27 = scalar_lea.hbm %s448_s1, 768 }
  0x14   :  { %s27_s24 = sshll.u32 %s353_s23, 4  ;;  %p301_p8 = scmp.ne.s32.totalorder %s448_s1, %s300_s27  ;;  %s28_s24 = int_to_ptr.vmem [resolvable:$true] %s27_s24 }
  0x15   :  { %p304_p9 = scmp.lt.u32.totalorder %s300_s27, %s448_s1 }
  0x17   :  { %p306_p10 = pnand %p304_p9, %p301_p8 }
  0x19   :  { %309 = shalt.err (!%p306_p10)
}
  0x1a   :  { %s310_s4 = scalar_lea.vmem %s28_s24, 768  ;;  %p315_p12 = scmp.lt.s32.totalorder %s28_s24, %s28_s24 }
  0x1b   :  { %p311_p11 = scmp.ne.s32.totalorder %s28_s24, %s310_s4  ;;  %p316_p13 = scmp.lt.s32.totalorder %s310_s4, %s310_s4 }
  0x1d   :  { %p317_p0 = por %p316_p13, %p315_p12 }
  0x1f   :  { %p318_p1 = pnand %p317_p0, %p311_p11 }
  0x21   :  { %321 = shalt.err (!%p318_p1)
}
  0x22   :  { %33 = dma.hbm_to_vmem [thread:$0]  %s448_s1, 768, %s28_s24, [#allocation6], %s351_s19, %s351_s19, %s352_s20  }
  0x23   :  { %344 = dma.done.wait [#allocation3], 768  }
  0x24   :  { %345 = vsyncadd [#allocation3], 4294966528 }
  0x25   :  { %346 = dma.done.wait [#allocation6], 768  }
  0x26   :  { %347 = vsyncadd [#allocation6], 4294966528  ;;  %v52_v0 = vld [vmem:[#allocation5] sm:$0xff]  ;;  %v53_v1 = vld [vmem:[#allocation5 + $0x8] sm:$0xff]  ;;  %vm64_vm0 = vcmask 261120   ;;  %vm73_vm1 = vcmask 1043456  }
  0x27   :  { %v40_v2 = vld [vmem:[#allocation2] sm:$0xff]  ;;  %v58_v3 = vmul.f32 0.5, %v52_v0  ;;  %v59_v4 = vmul.f32 0.5, %v53_v1  ;;  %v41_v5 = vld [vmem:[#allocation2 + $0x8] sm:$0xff]  ;;  %v42_v12 = vld [vmem:[#allocation2 + $0x10] sm:$0xff]  ;;  %vm75_vm2 = vcmask 257024  }
  0x28   :  { %v46_v6 = vmul.f32 0.5, %v40_v2  ;;  %v54_v7 = vld [vmem:[#allocation5 + $0x10] sm:$0xff]  ;;  %v55_v8 = vld [vmem:[#allocation5 + $0x18] sm:$0xff]  ;;  %v47_v9 = vmul.f32 0.5, %v41_v5  ;;  %v43_v13 = vld [vmem:[#allocation2 + $0x18] sm:$0xff]  ;;  %v48_v15 = vmul.f32 0.5, %v42_v12 }
  0x29   :  { %v60_v10 = vmul.f32 0.5, %v54_v7  ;;  %v61_v11 = vmul.f32 0.5, %v55_v8  ;;  %v117_v14 = vsel %vm64_vm0, %v59_v4, -inf  ;;  %v49_v16 = vmul.f32 0.5, %v43_v13  ;;  %v56_v17 = vld [vmem:[#allocation5 + $0x20] sm:$0xf] }
  0x2a   :  { %v118_v18 = vmax.f32 %v58_v3, %v117_v14  ;;  %v65_v19 = vsel %vm64_vm0, %v47_v9, -inf  ;;  %v57_v21 = vld [vmem:[#allocation5 + $0x28] sm:$0xf]  ;;  %v62_v22 = vmul.f32 0.5, %v56_v17  ;;  %v44_v26 = vld [vmem:[#allocation2 + $0x20] sm:$0xf] }
  0x2b   :  { %v121_v20 = vsel %vm64_vm0, %v61_v11, -inf  ;;  %v66_v23 = vmax.f32 %v46_v6, %v65_v19  ;;  %v69_v24 = vsel %vm64_vm0, %v49_v16, -inf  ;;  %v63_v25 = vmul.f32 0.5, %v57_v21  ;;  %v45_v27 = vld [vmem:[#allocation2 + $0x28] sm:$0xf]  ;;  %s354_s1 = smov [#allocation7]  }
  0x2c   :  { %119 = vmax.xlane.f32.xlu1 %v118_v18  ;;  %v122_v28 = vmax.f32 %v60_v10, %v121_v20  ;;  %v50_v29 = vmul.f32 0.5, %v44_v26  ;;  %v51_v30 = vmul.f32 0.5, %v45_v27  ;;  %v70_v31 = vmax.f32 %v48_v15, %v69_v24  ;;  %s221_s6 = sshll.u32 %s354_s1, 4  ;;  %s222_s6 = int_to_ptr.vmem [resolvable:$true] %s221_s6 }
  0x2d   :  { %67 = vmax.xlane.f32.xlu0 %v66_v23  ;;  %v125_v32 = vsel %vm73_vm1, %v62_v22, -inf  ;;  %v126_v33 = vsel %vm75_vm2, %v63_v25, -inf  ;;  %vm213_vm3 = vcmask 0   ;;  %s322_s7 = scalar_lea.vmem %s222_s6, 16  ;;  %s326_s8 = scalar_lea.vmem %s222_s6, 32 }
  0x2e   :  { %v74_v34 = vsel %vm73_vm1, %v50_v29, -inf  ;;  %v76_v35 = vsel %vm75_vm2, %v51_v30, -inf  ;;  %v127_v36 = vmax.f32 %v125_v32, %v126_v33  ;;  %p323_p2 = scmp.ne.s32.totalorder %s222_s6, %s322_s7  ;;  %p327_p3 = scmp.lt.s32.totalorder %s222_s6, %s222_s6 }
  0x2f   :  { %v77_v37 = vmax.f32 %v74_v34, %v76_v35  ;;  %p328_p4 = scmp.lt.s32.totalorder %s326_s8, %s322_s7 }
  0x30   :  { %123 = vmax.xlane.f32.xlu1 %v122_v28 }
  0x31   :  { %71 = vmax.xlane.f32.xlu0 %v70_v31  ;;  %p329_p5 = por %p328_p4, %p327_p3 }
  0x33   :  { %p330_p6 = pnand %p329_p5, %p323_p2 }
  0x34   :  { %128 = vmax.xlane.f32.xlu1 %v127_v36 }
  0x35   :  { %78 = vmax.xlane.f32.xlu0 %v77_v37 }
  0xb9   :  { %v120_v38 = vpop.xlane.xlu1 %119 }
  0xba   :  { %v402_v39 = vsub.f32 %v58_v3, %v120_v38  ;;  %v131_v40 = vsub.f32 %v59_v4, %v120_v38  ;;  %v68_v41 = vpop.xlane.xlu0 %67 }
  0xbb   :  { %v404_v42 = vsub.f32 %v46_v6, %v68_v41  ;;  %v81_v43 = vsub.f32 %v47_v9, %v68_v41 }
  0xbc   :  { %v136_v44 = vmul.f32 1.442695, %v402_v39  ;;  %v138_v45 = vmul.f32 1.442695, %v131_v40 }
  0xbd   :  { %v86_v46 = vmul.f32 1.442695, %v404_v42  ;;  %v88_v47 = vmul.f32 1.442695, %v81_v43  ;;  %v124_v48 = vpop.xlane.xlu1 %123  ;;  %v162_v17 = vsub.f32 %v131_v40, %v81_v43  ;;  %v161_v23 = vsub.f32 %v402_v39, %v404_v42 }
  0xbe   :  { %236 = vpow2.f32 %v136_v44  ;;  %v408_v49 = vsub.f32 %v60_v10, %v124_v48  ;;  %v410_v50 = vsub.f32 %v61_v11, %v124_v48  ;;  %v72_v51 = vpop.xlane.xlu0 %71 }
  0xbf   :  { %238 = vpow2.f32 %v138_v45  ;;  %v412_v52 = vsub.f32 %v48_v15, %v72_v51  ;;  %v83_v53 = vsub.f32 %v49_v16, %v72_v51 }
  0xc0   :  { %240 = vpow2.f32 %v86_v46  ;;  %v140_v54 = vmul.f32 1.442695, %v408_v49  ;;  %v142_v55 = vmul.f32 1.442695, %v410_v50 }
  0xc1   :  { %242 = vpow2.f32 %v88_v47  ;;  %v90_v56 = vmul.f32 1.442695, %v412_v52  ;;  %v92_v57 = vmul.f32 1.442695, %v83_v53  ;;  %v129_v58 = vpop.xlane.xlu1 %128  ;;  %v164_v26 = vsub.f32 %v410_v50, %v83_v53 }
  0xc2   :  { %244 = vpow2.f32 %v140_v54  ;;  %v134_v59 = vsub.f32 %v62_v22, %v129_v58  ;;  %v135_v60 = vsub.f32 %v63_v25, %v129_v58  ;;  %v79_v61 = vpop.xlane.xlu0 %78  ;;  %v163_v40 = vsub.f32 %v408_v49, %v412_v52 }
  0xc3   :  { %246 = vpow2.f32 %v142_v55  ;;  %v84_v62 = vsub.f32 %v50_v29, %v79_v61  ;;  %v85_v63 = vsub.f32 %v51_v30, %v79_v61 }
  0xc4   :  { %248 = vpow2.f32 %v90_v56  ;;  %v144_v0 = vmul.f32 1.442695, %v134_v59  ;;  %v146_v1 = vmul.f32 1.442695, %v135_v60 }
  0xc5   :  { %250 = vpow2.f32 %v92_v57  ;;  %v94_v2 = vmul.f32 1.442695, %v84_v62  ;;  %v96_v3 = vmul.f32 1.442695, %v85_v63  ;;  %v165_v27 = vsub.f32 %v134_v59, %v84_v62 }
  0xc6   :  { %252 = vpow2.f32 %v144_v0  ;;  %v166_v30 = vsub.f32 %v135_v60, %v85_v63 }
  0xc7   :  { %254 = vpow2.f32 %v146_v1 }
  0xc8   :  { %v237_v4 = vpop.eup %236  ;;  %256 = vpow2.f32 %v94_v2 }
  0xc9   :  { %v239_v5 = vpop.eup %238  ;;  %258 = vpow2.f32 %v96_v3  ;;  %v167_v35 = vmul.f32 %v237_v4, %v161_v23 }
  0xca   :  { %v241_v6 = vpop.eup %240  ;;  %v148_v10 = vsel %vm64_vm0, %v239_v5, 0.0  ;;  %v168_v24 = vmul.f32 %v239_v5, %v162_v17 }
  0xcb   :  { %v243_v7 = vpop.eup %242  ;;  %v149_v15 = vadd.f32 %v237_v4, %v148_v10 }
  0xcc   :  { %v245_v8 = vpop.eup %244  ;;  %v98_v9 = vsel %vm64_vm0, %v243_v7, 0.0  ;;  %v173_v36 = vsel %vm64_vm0, %v168_v24, 0.0 }
  0xcd   :  { %v247_v11 = vpop.eup %246  ;;  %v99_v12 = vadd.f32 %v241_v6, %v98_v9  ;;  %v174_v42 = vadd.f32 %v173_v36, %v167_v35  ;;  %v169_v43 = vmul.f32 %v245_v8, %v163_v40 }
  0xce   :  { %v249_v13 = vpop.eup %248  ;;  %v152_v19 = vsel %vm64_vm0, %v247_v11, 0.0  ;;  %v170_v37 = vmul.f32 %v247_v11, %v164_v26 }
  0xcf   :  { %v251_v14 = vpop.eup %250  ;;  %100 = vadd.xlane.f32.xlu0 %v99_v12  ;;  %v153_v28 = vadd.f32 %v245_v8, %v152_v19 }
  0xd0   :  { %v253_v16 = vpop.eup %252  ;;  %v102_v18 = vsel %vm64_vm0, %v251_v14, 0.0  ;;  %v177_v44 = vsel %vm64_vm0, %v170_v37, 0.0 }
  0xd1   :  { %v255_v20 = vpop.eup %254  ;;  %v103_v21 = vadd.f32 %v249_v13, %v102_v18  ;;  %v156_v32 = vsel %vm73_vm1, %v253_v16, 0.0  ;;  %v171_v38 = vmul.f32 %v253_v16, %v165_v27  ;;  %v178_v47 = vadd.f32 %v177_v44, %v169_v43 }
  0xd2   :  { %v257_v22 = vpop.eup %256  ;;  %v157_v33 = vsel %vm75_vm2, %v255_v20, 0.0  ;;  %v172_v39 = vmul.f32 %v255_v20, %v166_v30 }
  0xd3   :  { %v259_v25 = vpop.eup %258  ;;  %150 = vadd.xlane.f32.xlu0 %v149_v15  ;;  %104 = vadd.xlane.f32.xlu1 %v103_v21  ;;  %v106_v29 = vsel %vm73_vm1, %v257_v22, 0.0  ;;  %v158_v41 = vadd.f32 %v157_v33, %v156_v32  ;;  %v181_v45 = vsel %vm73_vm1, %v171_v38, 0.0 }
  0xd4   :  { %v107_v31 = vsel %vm75_vm2, %v259_v25, 0.0  ;;  %v182_v46 = vsel %vm75_vm2, %v172_v39, 0.0 }
  0xd5   :  { %v108_v34 = vadd.f32 %v107_v31, %v106_v29  ;;  %v183_v48 = vadd.f32 %v182_v46, %v181_v45 }
  0xd7   :  { %154 = vadd.xlane.f32.xlu1 %v153_v28  ;;  %109 = vadd.xlane.f32.xlu0 %v108_v34 }
  0xdb   :  { %159 = vadd.xlane.f32.xlu1 %v158_v41  ;;  %175 = vadd.xlane.f32.xlu0 %v174_v42 }
  0xdf   :  { %179 = vadd.xlane.f32.xlu1 %v178_v47  ;;  %184 = vadd.xlane.f32.xlu0 %v183_v48 }
 0x15c   :  { %v101_v50 = vpop.xlane.xlu0 %100 }
 0x160   :  { %v105_v51 = vpop.xlane.xlu1 %104  ;;  %v151_v49 = vpop.xlane.xlu0 %150 }
 0x161   :  { %260 = vrcp.f32 %v151_v49 }
 0x162   :  { %262 = vlog2.f32 %v105_v51 }
 0x163   :  { %264 = vlog2.f32 %v101_v50 }
 0x164   :  { %v155_v52 = vpop.xlane.xlu1 %154  ;;  %v110_v53 = vpop.xlane.xlu0 %109 }
 0x165   :  { %266 = vrcp.f32 %v155_v52 }
 0x166   :  { %268 = vlog2.f32 %v155_v52 }
 0x167   :  { %270 = vlog2.f32 %v110_v53 }
 0x168   :  { %272 = vlog2.f32 %v151_v49  ;;  %v160_v54 = vpop.xlane.xlu1 %159  ;;  %v176_v57 = vpop.xlane.xlu0 %175 }
 0x169   :  { %274 = vrcp.f32 %v160_v54 }
 0x16a   :  { %276 = vlog2.f32 %v160_v54 }
 0x16b   :  { %v261_v55 = vpop.eup %260 }
 0x16c   :  { %v263_v56 = vpop.eup %262  ;;  %v189_v60 = vmul.f32 %v261_v55, %v176_v57  ;;  %v180_v61 = vpop.xlane.xlu1 %179 }
 0x16d   :  { %v265_v58 = vpop.eup %264  ;;  %v114_v63 = vmul.f32 0.6931472, %v263_v56  ;;  %v185_v9 = vpop.xlane.xlu0 %184 }
 0x16e   :  { %v112_v2 = vmul.f32 0.6931472, %v265_v58 }
 0x16f   :  { %v267_v59 = vpop.eup %266 }
 0x170   :  { %v269_v62 = vpop.eup %268  ;;  %v190_v0 = vmul.f32 %v267_v59, %v180_v61  ;;  %v192_v8 = vadd.f32 %v189_v60, %v112_v2 }
 0x171   :  { %v271_v1 = vpop.eup %270  ;;  %v198_v7 = vmul.f32 0.6931472, %v269_v62 }
 0x172   :  { %v273_v3 = vpop.eup %272  ;;  %v116_v4 = vmul.f32 0.6931472, %v271_v1  ;;  %v193_v5 = vadd.f32 %v190_v0, %v114_v63 }
 0x173   :  { %v275_v6 = vpop.eup %274  ;;  %v196_v12 = vmul.f32 0.6931472, %v273_v3 }
 0x174   :  { %v277_v10 = vpop.eup %276  ;;  %v191_v11 = vmul.f32 %v275_v6, %v185_v9  ;;  %v202_v13 = vsub.f32 %v193_v5, %v198_v7 }
 0x175   :  { %v200_v14 = vmul.f32 0.6931472, %v277_v10  ;;  %v201_v16 = vsub.f32 %v192_v8, %v196_v12 }
 0x176   :  { %v194_v15 = vadd.f32 %v191_v11, %v116_v4 }
 0x177   :  { %v204_v18 = vadd.f32 %v202_v13, %v201_v16 }
 0x178   :  { %v203_v17 = vsub.f32 %v194_v15, %v200_v14 }
 0x17a   :  { %v205_v19 = vsel %vm73_vm1, %v203_v17, 0.0 }
 0x17b   :  { %v206_v20 = vadd.f32 %v205_v19, %v204_v18 }
 0x17d   :  { %v207_v21 = vrot.slane %v206_v20, 4 }
 0x17f   :  { %v208_v22 = vadd.f32 %v207_v21, %v206_v20 }
 0x181   :  { %v209_v23 = vrot.slane %v208_v22, 2 }
 0x183   :  { %v210_v24 = vadd.f32 %v209_v23, %v208_v22 }
 0x185   :  { %v211_v25 = vrot.slane %v210_v24, 1 }
 0x187   :  { %v212_v26 = vadd.f32 %v211_v25, %v210_v24 }
 0x189   :  { %214 = vst.msk [vmem:[#allocation7] sm:$0x1] %vm213_vm3, %v212_v26 }
 0x18a   :  { %333 = shalt.err (!%p330_p6)
}
 0x18b   :  { %s334_s11 = scalar_lea.hbm %s449_s2, 16 }
 0x18c   :  { %p335_p7 = scmp.ne.s32.totalorder %s449_s2, %s334_s11  ;;  %p338_p8 = scmp.lt.u32.totalorder %s334_s11, %s449_s2 }
 0x18e   :  { %p340_p9 = pnand %p338_p8, %p335_p7 }
 0x190   :  { %343 = shalt.err (!%p340_p9)
}
 0x191   :  { %224 = dma.vmem_to_hbm [thread:$0]  %s222_s6, 16, %s449_s2, [#allocation4]  }
 0x192   :  { %348 = dma.done.wait [#allocation4], 16  }
 0x193   :  { %349 = vsyncadd [#allocation4], 4294967280 }
 0x194   :  { %228 = vsyncpa [#allocation3], 1 }
 0x195   :  { %229 = vsyncpa [#allocation6], 1 }
 0x196   :  { %230 = vsyncpa [#allocation4], 1 }

</bundles_post_ra>
